<compile_context>
chip_gen: v7x
topology: tpu7x:2x2x1
jax: 0.10.0
libtpu: 0.0.40
codegen_flags: <defaults>
</compile_context>

<pallas_src>
import functools

import jax
import jax.numpy as jnp
from jax.experimental import pallas as pl
from jax.experimental.pallas import tpu as pltpu


def mlp_softmax_kernel(x_ref, w1_ref, b1_ref, w2_ref, b2_ref,
                       w3_ref, b3_ref, o_ref):
    x = x_ref[...]

    h1 = jnp.dot(x, w1_ref[...], preferred_element_type=jnp.float32)
    h1 = jnp.maximum(h1 + b1_ref[...], 0.0)                       # ReLU

    h2 = jnp.dot(h1, w2_ref[...], preferred_element_type=jnp.float32)
    h2 = jnp.maximum(h2 + b2_ref[...], 0.0)                       # ReLU

    logits = jnp.dot(h2, w3_ref[...], preferred_element_type=jnp.float32)
    logits = logits + b3_ref[...]

    # Dropout(p=0.3) in eval mode == identity (see TODO above).

    # Softmax over the last dim (what nn.Softmax() resolves to for 2-D input).
    m = jnp.max(logits, axis=-1, keepdims=True)
    e = jnp.exp(logits - m)
    denom = jnp.sum(e, axis=-1, keepdims=True)
    o_ref[...] = (e / denom).astype(o_ref.dtype)                  # exact norm


def _round_up(x, m):
    return ((x + m - 1) // m) * m


def _cdiv(a, b):
    return -(-a // b)


def _select_tile_b(batch, tile_b):
    """Batch tile: multiple of 8, <= tile_b; when the batch allows, prefer
    >= 2 (and even) grid steps so v7x's two TensorCores both get work."""
    tb = min(_round_up(tile_b, 8), _round_up(max(batch, 1), 8))
    if batch > 8:
        steps = _cdiv(batch, tb)
        if steps < 2:
            steps = 2
        elif steps % 2 == 1:
            steps += 1
        tb = min(tb, _round_up(_cdiv(batch, steps), 8))
    return max(tb, 8)


@functools.partial(jax.jit, static_argnames=("tile_b",))
def our_module_forward(x, params, tile_b=2048):
    """x: (batch, num_inputs) f32 -> (batch, num_classes) f32 softmax probs."""
    w1, b1, w2, b2, w3, b3 = params
    batch, num_inputs = x.shape
    num_classes = w3.shape[1]

    # ---- batch tiling (multiple of 8 sublanes, megacore-friendly) ----
    tb = _select_tile_b(batch, tile_b)
    padded_batch = _round_up(batch, tb)
    xp = x if padded_batch == batch else jnp.pad(
        x, ((0, padded_batch - batch), (0, 0)))

    grid = (padded_batch // tb,)

    cost = pl.CostEstimate(
        flops=2 * padded_batch * (num_inputs * 5 + 5 * 20 + 20 * num_classes),
        transcendentals=padded_batch * num_classes,
        bytes_accessed=padded_batch * (num_inputs + num_classes) * 4,
    )

    out = pl.pallas_call(
        mlp_softmax_kernel,
        out_shape=jax.ShapeDtypeStruct((padded_batch, num_classes),
                                       jnp.float32),
        grid=grid,
        in_specs=[
            # streaming x tiles: double-buffered per grid step
            pl.BlockSpec((tb, num_inputs), lambda i: (i, 0)),
            # weights/biases: constant block index -> resident in VMEM
            pl.BlockSpec(w1.shape, lambda i: (0, 0)),
            pl.BlockSpec(b1.shape, lambda i: (0, 0)),
            pl.BlockSpec(w2.shape, lambda i: (0, 0)),
            pl.BlockSpec(b2.shape, lambda i: (0, 0)),
            pl.BlockSpec(w3.shape, lambda i: (0, 0)),
            pl.BlockSpec(b3.shape, lambda i: (0, 0)),
        ],
        # Unpadded output: block last dim == full array dim (num_classes), so
        # HBM writeback is only the real classes (masked store, far fewer bytes).
        out_specs=pl.BlockSpec((tb, num_classes), lambda i: (i, 0)),
        compiler_params=pltpu.CompilerParams(
            dimension_semantics=("parallel",),
            vmem_limit_bytes=32 * 1024 * 1024,   # headroom over v5e's 16 MiB default
        ),
        cost_estimate=cost,
    )(xp, w1, b1, w2, b2, w3, b3)

    return out[:batch]


def init_params(key, num_inputs, num_classes):
    """Deterministic init mimicking nn.Linear's U(-1/sqrt(fan_in), +1/sqrt(fan_in))."""
    dims = [(num_inputs, 5), (5, 20), (20, num_classes)]
    params = []
    for i, (fan_in, fan_out) in enumerate(dims):
        kw, kb = jax.random.split(jax.random.fold_in(key, i))
        bound = 1.0 / jnp.sqrt(float(fan_in))
        w = jax.random.uniform(kw, (fan_in, fan_out), jnp.float32, -bound, bound)
        b = jax.random.uniform(kb, (1, fan_out), jnp.float32, -bound, bound)
        params += [w, b]
    return tuple(params)


def reference_forward(x, params):
    """Pure-JAX reference (eval-mode dropout == identity)."""
    w1, b1, w2, b2, w3, b3 = params
    h1 = jnp.maximum(x @ w1 + b1, 0.0)
    h2 = jnp.maximum(h1 @ w2 + b2, 0.0)
    logits = h2 @ w3 + b3
    return jax.nn.softmax(logits, axis=-1)


if __name__ == "__main__":
    key = jax.random.PRNGKey(0)
    num_inputs, num_classes = 32, 10
    kx, kp = jax.random.split(key)
    params = init_params(kp, num_inputs, num_classes)

    # Small single-tile case.
    batch = 8
    x = jax.random.normal(kx, (batch, num_inputs), jnp.float32)
    out = jax.block_until_ready(our_module_forward(x, params))
    assert out.shape == (batch, num_classes)
    assert jnp.allclose(jnp.sum(out, axis=-1), 1.0, atol=1e-5)
    ref = reference_forward(x, params)
    assert jnp.allclose(out, ref, atol=1e-4), "mismatch vs pure-JAX reference"

    # Multi-step grid + batch-padding case (exercises the tiling/padding path).
    batch2 = 300
    x2 = jax.random.normal(jax.random.fold_in(kx, 1), (batch2, num_inputs),
                           jnp.float32)
    out2 = jax.block_until_ready(our_module_forward(x2, params))
    assert out2.shape == (batch2, num_classes)
    assert jnp.allclose(jnp.sum(out2, axis=-1), 1.0, atol=1e-5)
    ref2 = reference_forward(x2, params)
    assert jnp.allclose(out2, ref2, atol=1e-4), "mismatch vs pure-JAX reference"

    print("KERNEL_OK")
</pallas_src>

<mosaic_0001>
module attributes {stable_mosaic.version = 11 : i64} {
  func.func @mlp_softmax_kernel(%arg0: i32, %arg1: memref<8x32xf32, #tpu.memory_space<vmem>>, %arg2: memref<32x5xf32, #tpu.memory_space<vmem>>, %arg3: memref<1x5xf32, #tpu.memory_space<vmem>>, %arg4: memref<5x20xf32, #tpu.memory_space<vmem>>, %arg5: memref<1x20xf32, #tpu.memory_space<vmem>>, %arg6: memref<20x10xf32, #tpu.memory_space<vmem>>, %arg7: memref<1x10xf32, #tpu.memory_space<vmem>>, %arg8: memref<8x10xf32, #tpu.memory_space<vmem>>) attributes {dimension_semantics = [#tpu.dimension_semantics<parallel>], iteration_bounds = array<i64: 1>, scalar_prefetch = 0 : i64, scratch_operands = 0 : i64, tpu.core_type = #tpu.core_type<tc>, window_params = [{transform_indices = @transform_0, window_bounds = array<i64: 8, 32>}, {pipeline_mode = #tpu.pipeline_mode<synchronous>, transform_indices = @transform_1, window_bounds = array<i64: 32, 5>}, {pipeline_mode = #tpu.pipeline_mode<synchronous>, transform_indices = @transform_2, window_bounds = array<i64: 1, 5>}, {pipeline_mode = #tpu.pipeline_mode<synchronous>, transform_indices = @transform_3, window_bounds = array<i64: 5, 20>}, {pipeline_mode = #tpu.pipeline_mode<synchronous>, transform_indices = @transform_4, window_bounds = array<i64: 1, 20>}, {pipeline_mode = #tpu.pipeline_mode<synchronous>, transform_indices = @transform_5, window_bounds = array<i64: 20, 10>}, {pipeline_mode = #tpu.pipeline_mode<synchronous>, transform_indices = @transform_6, window_bounds = array<i64: 1, 10>}, {transform_indices = @transform_7, window_bounds = array<i64: 8, 10>}]} {
    %c0 = arith.constant 0 : index
    %c0_0 = arith.constant 0 : index
    %0 = vector.load %arg1[%c0, %c0_0] : memref<8x32xf32, #tpu.memory_space<vmem>>, vector<8x32xf32>
    %c0_1 = arith.constant 0 : index
    %c0_2 = arith.constant 0 : index
    %1 = vector.load %arg2[%c0_1, %c0_2] : memref<32x5xf32, #tpu.memory_space<vmem>>, vector<32x5xf32>
    %cst = arith.constant dense<0.000000e+00> : vector<8x5xf32>
    %2 = tpu.matmul %0, %1, %cst {dimension_numbers = #tpu.dot_dimension_numbers<[1], [0], [0], [1], [0, 0, 1, 1], [], []>} : vector<8x32xf32>, vector<32x5xf32>, vector<8x5xf32> -> vector<8x5xf32>
    %c0_3 = arith.constant 0 : index
    %c0_4 = arith.constant 0 : index
    %3 = vector.load %arg3[%c0_3, %c0_4] : memref<1x5xf32, #tpu.memory_space<vmem>>, vector<1x5xf32>
    %4 = vector.broadcast %3 : vector<1x5xf32> to vector<8x5xf32>
    %5 = arith.addf %2, %4 : vector<8x5xf32>
    %cst_5 = arith.constant 0.000000e+00 : f32
    %6 = vector.broadcast %cst_5 : f32 to vector<8x5xf32>
    %7 = arith.maximumf %5, %6 : vector<8x5xf32>
    %c0_6 = arith.constant 0 : index
    %c0_7 = arith.constant 0 : index
    %8 = vector.load %arg4[%c0_6, %c0_7] : memref<5x20xf32, #tpu.memory_space<vmem>>, vector<5x20xf32>
    %cst_8 = arith.constant dense<0.000000e+00> : vector<8x20xf32>
    %9 = tpu.matmul %7, %8, %cst_8 {dimension_numbers = #tpu.dot_dimension_numbers<[1], [0], [0], [1], [0, 0, 1, 1], [], []>} : vector<8x5xf32>, vector<5x20xf32>, vector<8x20xf32> -> vector<8x20xf32>
    %c0_9 = arith.constant 0 : index
    %c0_10 = arith.constant 0 : index
    %10 = vector.load %arg5[%c0_9, %c0_10] : memref<1x20xf32, #tpu.memory_space<vmem>>, vector<1x20xf32>
    %11 = vector.broadcast %10 : vector<1x20xf32> to vector<8x20xf32>
    %12 = arith.addf %9, %11 : vector<8x20xf32>
    %cst_11 = arith.constant 0.000000e+00 : f32
    %13 = vector.broadcast %cst_11 : f32 to vector<8x20xf32>
    %14 = arith.maximumf %12, %13 : vector<8x20xf32>
    %c0_12 = arith.constant 0 : index
    %c0_13 = arith.constant 0 : index
    %15 = vector.load %arg6[%c0_12, %c0_13] : memref<20x10xf32, #tpu.memory_space<vmem>>, vector<20x10xf32>
    %cst_14 = arith.constant dense<0.000000e+00> : vector<8x10xf32>
    %16 = tpu.matmul %14, %15, %cst_14 {dimension_numbers = #tpu.dot_dimension_numbers<[1], [0], [0], [1], [0, 0, 1, 1], [], []>} : vector<8x20xf32>, vector<20x10xf32>, vector<8x10xf32> -> vector<8x10xf32>
    %c0_15 = arith.constant 0 : index
    %c0_16 = arith.constant 0 : index
    %17 = vector.load %arg7[%c0_15, %c0_16] : memref<1x10xf32, #tpu.memory_space<vmem>>, vector<1x10xf32>
    %18 = vector.broadcast %17 : vector<1x10xf32> to vector<8x10xf32>
    %19 = arith.addf %16, %18 : vector<8x10xf32>
    %cst_17 = arith.constant dense<0xFF800000> : vector<8xf32>
    %20 = vector.multi_reduction <maximumf>, %19, %cst_17 [1] : vector<8x10xf32> to vector<8xf32>
    %21 = vector.shape_cast %20 : vector<8xf32> to vector<8x1xf32>
    %22 = vector.broadcast %21 : vector<8x1xf32> to vector<8x10xf32>
    %23 = arith.subf %19, %22 : vector<8x10xf32>
    %24 = math.exp %23 : vector<8x10xf32>
    %cst_18 = arith.constant dense<0.000000e+00> : vector<8xf32>
    %25 = vector.multi_reduction <add>, %24, %cst_18 [1] : vector<8x10xf32> to vector<8xf32>
    %26 = vector.shape_cast %25 : vector<8xf32> to vector<8x1xf32>
    %27 = vector.broadcast %26 : vector<8x1xf32> to vector<8x10xf32>
    %28 = arith.divf %24, %27 : vector<8x10xf32>
    %c0_19 = arith.constant 0 : index
    %c0_20 = arith.constant 0 : index
    %29 = vector.load %arg8[%c0_19, %c0_20] : memref<8x10xf32, #tpu.memory_space<vmem>>, vector<8x10xf32>
    tpu.vector_store %arg8[%c0_19, %c0_20], %28 {strides = array<i32>} : memref<8x10xf32, #tpu.memory_space<vmem>>, vector<8x10xf32>,
    return
  }
  func.func @transform_0(%arg0: i32) -> (i32, i32) {
    %c0_i32 = arith.constant 0 : i32
    %c0_i32_0 = arith.constant 0 : i32
    return %arg0, %c0_i32 : i32, i32
  }
  func.func @transform_1(%arg0: i32) -> (i32, i32) {
    %c0_i32 = arith.constant 0 : i32
    %c0_i32_0 = arith.constant 0 : i32
    %c0_i32_1 = arith.constant 0 : i32
    return %c0_i32, %c0_i32_0 : i32, i32
  }
  func.func @transform_2(%arg0: i32) -> (i32, i32) {
    %c0_i32 = arith.constant 0 : i32
    %c0_i32_0 = arith.constant 0 : i32
    %c0_i32_1 = arith.constant 0 : i32
    return %c0_i32, %c0_i32_0 : i32, i32
  }
  func.func @transform_3(%arg0: i32) -> (i32, i32) {
    %c0_i32 = arith.constant 0 : i32
    %c0_i32_0 = arith.constant 0 : i32
    %c0_i32_1 = arith.constant 0 : i32
    return %c0_i32, %c0_i32_0 : i32, i32
  }
  func.func @transform_4(%arg0: i32) -> (i32, i32) {
    %c0_i32 = arith.constant 0 : i32
    %c0_i32_0 = arith.constant 0 : i32
    %c0_i32_1 = arith.constant 0 : i32
    return %c0_i32, %c0_i32_0 : i32, i32
  }
  func.func @transform_5(%arg0: i32) -> (i32, i32) {
    %c0_i32 = arith.constant 0 : i32
    %c0_i32_0 = arith.constant 0 : i32
    %c0_i32_1 = arith.constant 0 : i32
    return %c0_i32, %c0_i32_0 : i32, i32
  }
  func.func @transform_6(%arg0: i32) -> (i32, i32) {
    %c0_i32 = arith.constant 0 : i32
    %c0_i32_0 = arith.constant 0 : i32
    %c0_i32_1 = arith.constant 0 : i32
    return %c0_i32, %c0_i32_0 : i32, i32
  }
  func.func @transform_7(%arg0: i32) -> (i32, i32) {
    %c0_i32 = arith.constant 0 : i32
    %c0_i32_0 = arith.constant 0 : i32
    return %arg0, %c0_i32 : i32, i32
  }
}

</mosaic_0001>

<bundles_post_ra>
// kernel: our_module_forward.1
= control target key start
LH: loop header
LB: loop body
LE: loop exit
PB: predicated region body
PF: predicated region fallthrough
CT: control target
= control target key end

     0   :  { %v401_v3 = vmov 0.0|0.0   ;;  %vm402_vm0 = vmmov 0   ;;  %v403_v6 = vmov 0.0   ;;  %s499_s0 = inlined_call_operand.vmem [shape: f32[8,32], index: 0, kind: input, shape index: {}]   ;;  %s500_s1 = inlined_call_operand.vmem [shape: f32[32,5], index: 1, kind: input, shape index: {}]   ;;  %s501_s2 = inlined_call_operand.vmem [shape: f32[1,5], index: 2, kind: input, shape index: {}]   ;;  %s502_s3 = inlined_call_operand.vmem [shape: f32[5,20], index: 3, kind: input, shape index: {}]   ;;  %s503_s4 = inlined_call_operand.vmem [shape: f32[1,20], index: 4, kind: input, shape index: {}]   ;;  %s504_s5 = inlined_call_operand.vmem [shape: f32[20,10], index: 5, kind: input, shape index: {}]   ;;  %s505_s6 = inlined_call_operand.vmem [shape: f32[1,10], index: 6, kind: input, shape index: {}]   ;;  %s506_s7 = inlined_call_operand.hbm [shape: f32[8,10], index: 7, kind: output, shape index: {}]  }
   0x1   :  { %v28_v0 = vld [vmem:[%s500_s1] sm:$0xff]  ;;  %v29_v1 = vld [vmem:[%s500_s1 + $0x8] sm:$0xff]  ;;  %v30_v2 = vld [vmem:[%s500_s1 + $0x10] sm:$0xff]  ;;  %360 = vmatprep.subr.bf16.mxu0 %v401_v3  ;;  %343 = vmatprep.mubr.msk.f32.mxu0 %vm402_vm0, %v403_v6 }
   0x2   :  { %v361_v4 = vpack.c.bf16 %v29_v1, %v28_v0  ;;  %v31_v5 = vld [vmem:[%s500_s1 + $0x18] sm:$0xff]  ;;  %346 = vmatprep.subr.mxu1 %v403_v6  ;;  %348 = vmatprep.mubr.msk.f32.mxu1 %vm402_vm0, %v403_v6 }
   0x3   :  { %12 = vsyncpa [#allocation3], 0  ;;  %v364_v7 = vpack.c.bf16 %v31_v5, %v30_v2  ;;  %v27_v8 = vld [vmem:[%s499_s0] sm:$0xff]  ;;  %vm39_vm1 = vcmask 261120   ;;  %vm126_vm2 = vcmask 1044480   ;;  %v202_v12 = vld [vmem:[%s504_s5 + $0x8] sm:$0xff] }
   0x4   :  { %362 = vmatpush3.bf16.msra.mxu0 %v361_v4  ;;  %v114_v9 = vld [vmem:[%s502_s3] sm:$0x1f]  ;;  %vm122_vm3 = vcmask 39936   ;;  %v203_v18 = vld [vmem:[%s504_s5 + $0x10] sm:$0xf]  ;;  %vm215_vm4 = vcmask 1043456  }
   0x5   :  { %363 = vmatprep.subr.bf16.mxu0 %v401_v3  ;;  %347 = vmatpush3.msk.msra.mxu1 %vm126_vm2, %v114_v9  ;;  %v316_v10 = vld [vmem:[%s501_s2] ss:$0 sm:$0xff]  ;;  %vm211_vm5 = vcmask 162816   ;;  %vm289_vm6 = vcmask 80896  }
   0x6   :  { %366 = vmatprep.subr.bf16.mxu1 %v401_v3  ;;  %v201_v11 = vld [vmem:[%s504_s5] sm:$0xff] }
   0x7   :  { %v367_v16 = vpack.c.bf16 %v202_v12, %v201_v11  ;;  %v318_v19 = vld [vmem:[%s503_s4] ss:$0 sm:$0xff]  ;;  %s404_s4 = smov [#allocation2]  }
   0x8   :  { %365 = vmatpush3.bf16.msra.mxu0 %v364_v7  ;;  %v321_v24 = vld [vmem:[%s505_s6] ss:$0 sm:$0xff]  ;;  %s308_s5 = sshll.u32 %s404_s4, 4  ;;  %s309_s5 = int_to_ptr.vmem [resolvable:$true] %s308_s5 }
   0x9   :  { %s377_s6 = scalar_lea.vmem %s309_s5, 128  ;;  %p382_p1 = scmp.lt.s32.totalorder %s309_s5, %s309_s5 }
   0xa   :  { %p378_p0 = scmp.ne.s32.totalorder %s309_s5, %s377_s6  ;;  %p383_p2 = scmp.lt.s32.totalorder %s377_s6, %s377_s6 }
   0xb   :  { %344 = vmatmul.mubr.msk.f32.vlgmr.msra.gmra.mrb[0].mxu0 %vm39_vm1, %v27_v8 }
   0xc   :  { %p384_p3 = por %p383_p2, %p382_p1 }
   0xe   :  { %p385_p4 = pnand %p384_p3, %p378_p0 }
  0xde   :  { %v109_v13 = vpop.f32.mrb[0].mxu0 }
  0xdf   :  { %v110_v14 = vadd.f32 %v316_v10, %v109_v13  ;;  %v345_v15 = vpop.f32.mrb[1].mxu0 }
  0xe1   :  { %v113_v17 = vmax.f32 %v110_v14, 0.0 }
  0xe3   :  { %349 = vmatmul.mubr.msk.f32.vlgmr.msra.gmra.mrb[0].mxu1 %vm122_vm3, %v113_v17 }
  0xe4   :  { %368 = vmatpush3.bf16.msra.mxu1 %v367_v16  ;;  %357 = vmatprep.mubr.msk.f32.mxu1 %vm402_vm0, %v403_v6 }
  0xe5   :  { %355 = vmatprep.subr.mxu1 %v403_v6 }
  0xe8   :  { %356 = vmatpush3.msk.msra.mxu1 %vm215_vm4, %v203_v18 }
 0x1b6   :  { %v196_v20 = vpop.f32.mrb[0].mxu1 }
 0x1b7   :  { %v197_v21 = vadd.f32 %v318_v19, %v196_v20  ;;  %v350_v22 = vpop.f32.mrb[1].mxu1 }
 0x1b9   :  { %v200_v23 = vmax.f32 %v197_v21, 0.0 }
 0x1bb   :  { %358 = vmatmul.mubr.msk.f32.vlgmr.msra.gmra.mrb[2].mxu1 %vm211_vm5, %v200_v23 }
 0x28e   :  { %v285_v25 = vpop.f32.mrb[2].mxu1 }
 0x28f   :  { %v286_v26 = vadd.f32 %v321_v24, %v285_v25  ;;  %v359_v27 = vpop.f32.mrb[3].mxu1 }
 0x291   :  { %v290_v28 = vsel %vm289_vm6, %v286_v26, -inf }
 0x292   :  { %291 = vmax.xlane.f32.xlu0 %v290_v28 }
 0x31f   :  { %v292_v29 = vpop.xlane.xlu0 %291 }
 0x320   :  { %v293_v30 = vsub.f32 %v286_v26, %v292_v29 }
 0x322   :  { %v294_v31 = vmul.f32 1.442695, %v293_v30 }
 0x324   :  { %373 = vpow2.f32 %v294_v31 }
 0x32e   :  { %v374_v32 = vpop.eup %373 }
 0x32f   :  { %v296_v33 = vsel %vm289_vm6, %v374_v32, 0.0 }
 0x330   :  { %297 = vadd.xlane.f32.xlu0 %v296_v33 }
 0x3bd   :  { %v298_v34 = vpop.xlane.xlu0 %297 }
 0x3be   :  { %375 = vrcp.f32 %v298_v34 }
 0x3c8   :  { %v376_v35 = vpop.eup %375 }
 0x3c9   :  { %v300_v36 = vmul.f32 %v376_v35, %v374_v32 }
 0x3cb   :  { %301 = vst.msk [vmem:[#allocation2] sm:$0xff] %vm289_vm6, %v300_v36 }
 0x3cc   :  { %388 = shalt.err (!%p385_p4)
}
 0x3cd   :  { %s389_s23 = scalar_lea.hbm %s506_s7, 128 }
 0x3ce   :  { %p390_p5 = scmp.ne.s32.totalorder %s506_s7, %s389_s23  ;;  %p393_p6 = scmp.lt.u32.totalorder %s389_s23, %s506_s7 }
 0x3d0   :  { %p395_p7 = pnand %p393_p6, %p390_p5 }
 0x3d2   :  { %398 = shalt.err (!%p395_p7)
}
 0x3d3   :  { %311 = dma.vmem_to_hbm [thread:$0]  %s309_s5, 128, %s506_s7, [#allocation3]  }
 0x3d4   :  { %399 = dma.done.wait [#allocation3], 128  }
 0x3d5   :  { %400 = vsyncadd [#allocation3], 4294967168 }
 0x3d6   :  { %315 = vsyncpa [#allocation3], 1 }

</bundles_post_ra>
